<compile_context>
chip_gen: v7x
topology: tpu7x:2x2x1
jax: 0.10.0
libtpu: 0.0.40
codegen_flags: <defaults>
</compile_context>

<pallas_src>
import jax
import jax.numpy as jnp
from jax.experimental import pallas as pl
from jax.experimental.pallas import tpu as pltpu

BN_EPS = 1e-5


def coordatt_kernel(x_ref, w1_ref, b1_ref, w2_ref, b2_ref, o_ref):
    # x_ref block: (Bt, C, W) channels-first, Bt batch elements per grid step.
    x = x_ref[...].astype(jnp.float32)                     # (Bt, C, W)
    w = x.shape[-1]                                        # static block width

    # AdaptiveAvgPool1d(1): mean over the length dim W -> (Bt, C)
    pooled = jnp.sum(x, axis=-1) * (1.0 / w)

    # Conv1d(C, MID, k=1) with BN folded in: (Bt, C) @ (C, MID) + b1'
    y = jnp.dot(pooled, w1_ref[...],
                preferred_element_type=jnp.float32) + b1_ref[...]      # (Bt, MID)

    # ReLU
    y = jnp.maximum(y, 0.0)

    # Conv1d(MID, C, k=1) == (Bt, MID) @ (MID, C) + bias, then sigmoid
    z = jnp.dot(y, w2_ref[...],
                preferred_element_type=jnp.float32) + b2_ref[...]      # (Bt, C)
    ca = jax.nn.sigmoid(z)                                             # (Bt, C)

    # identity * ca  (broadcast attention over the lane/W dim)
    o_ref[...] = (x * ca[:, :, None]).astype(o_ref.dtype)


def _choose_bt(b, c, w, itemsize, target_bytes=2 << 20):
    """Largest divisor of b whose block fits `target_bytes`, keeping >=2 grid
    steps when b >= 2 (so both v7x TensorCores get work)."""
    best = 1
    for d in range(1, b + 1):
        if b % d:
            continue
        if d * c * w * itemsize > target_bytes:
            continue
        if b >= 2 and b // d < 2:
            continue
        best = d
    return best


def coord_att(x_ncw, params):
    """x_ncw: (B, C, W) float32 (PyTorch NCW convention, kept as-is)."""
    b, c, w = x_ncw.shape
    mid = params["w1"].shape[1]

    # Fold BN + conv1 bias into the first 1x1 conv on the host.
    scale = params["gamma"] * jax.lax.rsqrt(params["rv"] + BN_EPS)     # (1, MID)
    w1f = params["w1"] * scale                                         # (C, MID)
    b1f = (params["b1"] - params["rm"]) * scale + params["beta"]       # (1, MID)

    bt = _choose_bt(b, c, w, x_ncw.dtype.itemsize)
    grid = (b // bt,)

    def full_spec(shp):
        return pl.BlockSpec(shp, lambda i, _n=len(shp): (0,) * _n)

    out = pl.pallas_call(
        coordatt_kernel,
        out_shape=jax.ShapeDtypeStruct((b, c, w), x_ncw.dtype),
        grid=grid,
        in_specs=[
            pl.BlockSpec((bt, c, w), lambda i: (i, 0, 0)),  # x (NCW, no transpose)
            full_spec((c, mid)),                            # folded conv1 weight
            full_spec((1, mid)),                            # folded conv1 bias
            full_spec((mid, c)),                            # conv2 weight
            full_spec((1, c)),                              # conv2 bias
        ],
        out_specs=pl.BlockSpec((bt, c, w), lambda i: (i, 0, 0)),
        compiler_params=pltpu.CompilerParams(
            dimension_semantics=("parallel",),
            vmem_limit_bytes=64 * 1024 * 1024),
    )(x_ncw, w1f, b1f, params["w2"], params["b2"])

    return out


def reference(x_ncw, p):
    """Pure-JAX reference matching the PyTorch forward (eval-mode BN)."""
    pooled = jnp.mean(x_ncw, axis=-1)                      # (B, C)
    y = pooled @ p["w1"] + p["b1"]                         # (B, MID)
    y = (y - p["rm"]) * jax.lax.rsqrt(p["rv"] + BN_EPS) * p["gamma"] + p["beta"]
    y = jnp.maximum(y, 0.0)
    z = y @ p["w2"] + p["b2"]                              # (B, C)
    ca = jax.nn.sigmoid(z)
    return x_ncw * ca[:, :, None]


if __name__ == "__main__":
    B, C, W = 2, 64, 128
    REDUCTION = 32
    MID = max(8, C // REDUCTION)                           # = 8

    key = jax.random.PRNGKey(0)
    ks = jax.random.split(key, 9)
    params = {
        "w1":    jax.random.normal(ks[0], (C, MID), jnp.float32) * 0.1,
        "b1":    jax.random.normal(ks[1], (1, MID), jnp.float32) * 0.1,
        "gamma": jax.random.uniform(ks[2], (1, MID), jnp.float32, 0.5, 1.5),
        "beta":  jax.random.normal(ks[3], (1, MID), jnp.float32) * 0.1,
        "rm":    jax.random.normal(ks[4], (1, MID), jnp.float32) * 0.1,
        "rv":    jax.random.uniform(ks[5], (1, MID), jnp.float32, 0.5, 1.5),
        "w2":    jax.random.normal(ks[6], (MID, C), jnp.float32) * 0.1,
        "b2":    jax.random.normal(ks[7], (1, C), jnp.float32) * 0.1,
    }
    x = jax.random.normal(ks[8], (B, C, W), jnp.float32)

    out = jax.block_until_ready(coord_att(x, params))
    ref = reference(x, params)

    assert out.shape == x.shape, (out.shape, x.shape)
    assert jnp.allclose(out, ref, atol=1e-4, rtol=1e-4), \
        f"max abs err {jnp.max(jnp.abs(out - ref))}"
    print("KERNEL_OK")
</pallas_src>

<mosaic_0001>
module attributes {stable_mosaic.version = 11 : i64} {
  func.func @coordatt_kernel(%arg0: i32, %arg1: memref<1x64x128xf32, #tpu.memory_space<vmem>>, %arg2: memref<64x8xf32, #tpu.memory_space<vmem>>, %arg3: memref<1x8xf32, #tpu.memory_space<vmem>>, %arg4: memref<8x64xf32, #tpu.memory_space<vmem>>, %arg5: memref<1x64xf32, #tpu.memory_space<vmem>>, %arg6: memref<1x64x128xf32, #tpu.memory_space<vmem>>) attributes {dimension_semantics = [#tpu.dimension_semantics<parallel>], iteration_bounds = array<i64: 2>, scalar_prefetch = 0 : i64, scratch_operands = 0 : i64, tpu.core_type = #tpu.core_type<tc>, window_params = [{transform_indices = @transform_0, window_bounds = array<i64: 1, 64, 128>}, {pipeline_mode = #tpu.pipeline_mode<synchronous>, transform_indices = @transform_1, window_bounds = array<i64: 64, 8>}, {pipeline_mode = #tpu.pipeline_mode<synchronous>, transform_indices = @transform_2, window_bounds = array<i64: 1, 8>}, {pipeline_mode = #tpu.pipeline_mode<synchronous>, transform_indices = @transform_3, window_bounds = array<i64: 8, 64>}, {pipeline_mode = #tpu.pipeline_mode<synchronous>, transform_indices = @transform_4, window_bounds = array<i64: 1, 64>}, {transform_indices = @transform_5, window_bounds = array<i64: 1, 64, 128>}]} {
    %c0 = arith.constant 0 : index
    %c0_0 = arith.constant 0 : index
    %c0_1 = arith.constant 0 : index
    %0 = vector.load %arg1[%c0, %c0_0, %c0_1] : memref<1x64x128xf32, #tpu.memory_space<vmem>>, vector<1x64x128xf32>
    %cst = arith.constant dense<0.000000e+00> : vector<1x64xf32>
    %1 = vector.multi_reduction <add>, %0, %cst [2] : vector<1x64x128xf32> to vector<1x64xf32>
    %cst_2 = arith.constant 7.812500e-03 : f32
    %2 = vector.broadcast %cst_2 : f32 to vector<1x64xf32>
    %3 = arith.mulf %1, %2 : vector<1x64xf32>
    %c0_3 = arith.constant 0 : index
    %c0_4 = arith.constant 0 : index
    %4 = vector.load %arg2[%c0_3, %c0_4] : memref<64x8xf32, #tpu.memory_space<vmem>>, vector<64x8xf32>
    %cst_5 = arith.constant dense<0.000000e+00> : vector<1x8xf32>
    %5 = tpu.matmul %3, %4, %cst_5 {dimension_numbers = #tpu.dot_dimension_numbers<[1], [0], [0], [1], [0, 0, 1, 1], [], []>} : vector<1x64xf32>, vector<64x8xf32>, vector<1x8xf32> -> vector<1x8xf32>
    %c0_6 = arith.constant 0 : index
    %c0_7 = arith.constant 0 : index
    %6 = vector.load %arg3[%c0_6, %c0_7] : memref<1x8xf32, #tpu.memory_space<vmem>>, vector<1x8xf32>
    %7 = arith.addf %5, %6 : vector<1x8xf32>
    %cst_8 = arith.constant 0.000000e+00 : f32
    %8 = vector.broadcast %cst_8 : f32 to vector<1x8xf32>
    %9 = arith.maximumf %7, %8 : vector<1x8xf32>
    %c0_9 = arith.constant 0 : index
    %c0_10 = arith.constant 0 : index
    %10 = vector.load %arg4[%c0_9, %c0_10] : memref<8x64xf32, #tpu.memory_space<vmem>>, vector<8x64xf32>
    %cst_11 = arith.constant dense<0.000000e+00> : vector<1x64xf32>
    %11 = tpu.matmul %9, %10, %cst_11 {dimension_numbers = #tpu.dot_dimension_numbers<[1], [0], [0], [1], [0, 0, 1, 1], [], []>} : vector<1x8xf32>, vector<8x64xf32>, vector<1x64xf32> -> vector<1x64xf32>
    %c0_12 = arith.constant 0 : index
    %c0_13 = arith.constant 0 : index
    %12 = vector.load %arg5[%c0_12, %c0_13] : memref<1x64xf32, #tpu.memory_space<vmem>>, vector<1x64xf32>
    %13 = arith.addf %11, %12 : vector<1x64xf32>
    %14 = arith.negf %13 : vector<1x64xf32>
    %15 = math.exp %14 : vector<1x64xf32>
    %cst_14 = arith.constant 1.000000e+00 : f32
    %16 = vector.broadcast %cst_14 : f32 to vector<1x64xf32>
    %17 = arith.addf %16, %15 : vector<1x64xf32>
    %18 = arith.divf %16, %17 : vector<1x64xf32>
    %19 = vector.shape_cast %18 : vector<1x64xf32> to vector<1x64x1xf32>
    %20 = vector.broadcast %19 : vector<1x64x1xf32> to vector<1x64x128xf32>
    %21 = arith.mulf %0, %20 : vector<1x64x128xf32>
    %c0_15 = arith.constant 0 : index
    %c0_16 = arith.constant 0 : index
    %c0_17 = arith.constant 0 : index
    %22 = vector.load %arg6[%c0_15, %c0_16, %c0_17] : memref<1x64x128xf32, #tpu.memory_space<vmem>>, vector<1x64x128xf32>
    tpu.vector_store %arg6[%c0_15, %c0_16, %c0_17], %21 {strides = array<i32>} : memref<1x64x128xf32, #tpu.memory_space<vmem>>, vector<1x64x128xf32>,
    return
  }
  func.func @transform_0(%arg0: i32) -> (i32, i32, i32) {
    %c0_i32 = arith.constant 0 : i32
    %c0_i32_0 = arith.constant 0 : i32
    %c0_i32_1 = arith.constant 0 : i32
    return %arg0, %c0_i32, %c0_i32_0 : i32, i32, i32
  }
  func.func @transform_1(%arg0: i32) -> (i32, i32) {
    %c0_i32 = arith.constant 0 : i32
    %c0_i32_0 = arith.constant 0 : i32
    %c0_i32_1 = arith.constant 0 : i32
    return %c0_i32, %c0_i32_0 : i32, i32
  }
  func.func @transform_2(%arg0: i32) -> (i32, i32) {
    %c0_i32 = arith.constant 0 : i32
    %c0_i32_0 = arith.constant 0 : i32
    %c0_i32_1 = arith.constant 0 : i32
    return %c0_i32, %c0_i32_0 : i32, i32
  }
  func.func @transform_3(%arg0: i32) -> (i32, i32) {
    %c0_i32 = arith.constant 0 : i32
    %c0_i32_0 = arith.constant 0 : i32
    %c0_i32_1 = arith.constant 0 : i32
    return %c0_i32, %c0_i32_0 : i32, i32
  }
  func.func @transform_4(%arg0: i32) -> (i32, i32) {
    %c0_i32 = arith.constant 0 : i32
    %c0_i32_0 = arith.constant 0 : i32
    %c0_i32_1 = arith.constant 0 : i32
    return %c0_i32, %c0_i32_0 : i32, i32
  }
  func.func @transform_5(%arg0: i32) -> (i32, i32, i32) {
    %c0_i32 = arith.constant 0 : i32
    %c0_i32_0 = arith.constant 0 : i32
    %c0_i32_1 = arith.constant 0 : i32
    return %arg0, %c0_i32, %c0_i32_0 : i32, i32, i32
  }
}

</mosaic_0001>

<bundles_post_ra>
// kernel: tpu_custom_call.1
= control target key start
LH: loop header
LB: loop body
LE: loop exit
PB: predicated region body
PF: predicated region fallthrough
CT: control target
= control target key end

     0   :  { %10 = vsyncpa [#allocation3], 0  ;;  %s1494_s0 = inlined_call_operand.hbm [shape: f32[2,64,128], index: 0, kind: input, shape index: {}]   ;;  %s1495_s1 = inlined_call_operand.hbm [shape: f32[64,8], index: 1, kind: input, shape index: {}]   ;;  %s1496_s2 = inlined_call_operand.hbm [shape: f32[1,8], index: 2, kind: input, shape index: {}]   ;;  %s1497_s3 = inlined_call_operand.hbm [shape: f32[8,64], index: 3, kind: input, shape index: {}]   ;;  %s1498_s4 = inlined_call_operand.hbm [shape: f32[1,64], index: 4, kind: input, shape index: {}]   ;;  %s1499_s5 = inlined_call_operand.hbm [shape: f32[2,64,128], index: 5, kind: output, shape index: {}]  }
   0x1   :  { %12 = vsyncpa [#allocation3 + $0x1], 0 }
   0x2   :  { %13 = vsyncpa [#allocation6], 0 }
   0x3   :  { %14 = vsyncpa [#allocation9], 0 }
   0x4   :  { %15 = vsyncpa [#allocation4], 0 }
   0x5   :  { %17 = vsyncpa [#allocation4 + $0x1], 0  ;;  %s1164_s18 = smov 0   ;;  %s1166_s19 = smov 0  }
   0x6   :  { %s1168_s20 = smov 0   ;;  %s1170_s21 = smov 0  }
   0x7 LB: > { %s1185_s22 = sadd.s32 4294967295, %s1119_s21   ;;  %s731_s23 = sadd.s32 4294967294, %s1119_s21   ;;  %s1119_s21 = sphi %s1170_s21, %s1522_s21   ;;  %s1115_s20 = sphi %s1168_s20, %s1521_s20   ;;  %s1111_s19 = sphi %s1166_s19, %s1520_s19   ;;  %s1107_s18 = sphi %s1164_s18, %s1519_s18  }
   0x8   : > { %p43_p0 = scmp.ne.s32.totalorder %s1111_s19, %s1107_s18  ;;  %p1500_p1 = scmp.eq.s32.totalorder %s1185_s22, 0 }
   0x9   : > { %p157_p3 = scmp.eq.s32.totalorder %s731_s23, 1  ;;  %p732_p5 = scmp.ge.s32.totalorder %s1119_s21, 1 }
   0xa   : > { %p1194_p4 = por %p1500_p1, %p43_p0  ;;  %p164_p7 = scmp.lt.s32.totalorder %s1119_s21, 3 }
   0xb   : > { %p1199_p6 = por %p157_p3, %p43_p0  ;;  %s1121_s27 = smov [#allocation5]  }
   0xc   : > { %s1503_s24 = scalar_select %p1194_p4, 1, 0 }
   0xd   : > { %s1504_s25 = scalar_select %p1199_p6, 1, 0 }
   0xe   : > { %p1204_p8 = pnand %p732_p5, %p164_p7  ;;  %s176_s28 = sshll.u32 %s1121_s27, 4  ;;  %s1208_s28 = int_to_ptr.vmem [resolvable:$true] %s176_s28 }
   0xf   : > { %s1122_s30 = smov [#allocation8]   ;;  %s1123_s7 = smov [#allocation7]  }
  0x10   : > { %s1505_s26 = scalar_select %p1204_p8, 1, 0 }
  0x11   : > { %p825_p9 = pneg %p1204_p8  ;;  %s201_s6 = sshll.u32 %s1122_s30, 4  ;;  %s1219_s6 = int_to_ptr.vmem [resolvable:$true] %s201_s6 }
  0x12   : > { %s1221_s8 = sshll.u32 %s1123_s7, 4  ;;  %s903_s11 = scalar_lea.hbm %s1495_s1, 1024  ;;  %s191_s8 = int_to_ptr.vmem [resolvable:$true] %s1221_s8 }
  0x13   : > { %p1215_p11 = pnand %p825_p9, %p1500_p1  ;;  %p904_p12 = scmp.ne.s32.totalorder %s1495_s1, %s903_s11 }
  0x14   : > { %p910_p5 = scmp.lt.u32.totalorder %s903_s11, %s1495_s1 }
  0x15   : > { %p1231_p13 = pneg %p1215_p11 }
  0x17   : > { %p906_p0 = pnand %p1231_p13, %p904_p12 }
  0x19   : > { %p907_p3 = pneg %p906_p0 }
  0x1b   : > { %p912_p7 = pnand %p910_p5, %p907_p3 }
  0x1d   : > { %915 = shalt.err (!%p912_p7)
}
  0x1e   : > { %s916_s17 = scalar_lea.vmem %s1208_s28, 1024  ;;  %p924_p2 = scmp.lt.s32.totalorder %s1208_s28, %s1208_s28 }
  0x1f   : > { %p917_p9 = scmp.ne.s32.totalorder %s1208_s28, %s916_s17  ;;  %p925_p6 = scmp.lt.s32.totalorder %s916_s17, %s916_s17 }
  0x21   : > { %p919_p10 = pnand %p917_p9, %p1231_p13  ;;  %p926_p12 = por %p925_p6, %p924_p2 }
  0x23   : > { %p920_p1 = pneg %p919_p10 }
  0x25   : > { %p927_p0 = pnand %p926_p12, %p920_p1 }
  0x27   : > { %930 = shalt.err (!%p927_p0)
}
  0x28   : > { %s1124_s23 = smov 128   ;;  %s1125_s27 = smov 8  }
  0x29   : > { %828 = dma.hbm_to_vmem [thread:$0]  (!%p1215_p11), %s1495_s1, 1024, %s1208_s28, [#allocation6], %s1124_s23, %s1124_s23, %s1125_s27  }
  0x2a   : > { %s931_s11 = scalar_lea.hbm %s1497_s3, 128 }
  0x2b   : > { %p932_p1 = scmp.ne.s32.totalorder %s1497_s3, %s931_s11  ;;  %p938_p10 = scmp.lt.u32.totalorder %s931_s11, %s1497_s3 }
  0x2d   : > { %p934_p2 = pnand %p932_p1, %p1231_p13 }
  0x2f   : > { %p935_p6 = pneg %p934_p2 }
  0x31   : > { %p940_p3 = pnand %p938_p10, %p935_p6 }
  0x33   : > { %943 = shalt.err (!%p940_p3)
}
  0x34   : > { %s944_s28 = scalar_lea.vmem %s1219_s6, 128  ;;  %p952_p12 = scmp.lt.s32.totalorder %s1219_s6, %s1219_s6 }
  0x35   : > { %p945_p5 = scmp.ne.s32.totalorder %s1219_s6, %s944_s28  ;;  %p953_p0 = scmp.lt.s32.totalorder %s944_s28, %s944_s28 }
  0x37   : > { %p947_p7 = pnand %p945_p5, %p1231_p13  ;;  %p954_p1 = por %p953_p0, %p952_p12 }
  0x39   : > { %p948_p9 = pneg %p947_p7 }
  0x3b   : > { %p955_p2 = pnand %p954_p1, %p948_p9 }
  0x3d   : > { %958 = shalt.err (!%p955_p2)
}
  0x3e   : > { %834 = dma.hbm_to_vmem [thread:$0]  (!%p1215_p11), %s1497_s3, 128, %s1219_s6, [#allocation9]  }
  0x3f   : > { %s959_s10 = scalar_lea.hbm %s1496_s2, 16 }
  0x40   : > { %p960_p6 = scmp.ne.s32.totalorder %s1496_s2, %s959_s10  ;;  %p966_p5 = scmp.lt.u32.totalorder %s959_s10, %s1496_s2 }
  0x42   : > { %p962_p10 = pnand %p960_p6, %p1231_p13 }
  0x44   : > { %p963_p3 = pneg %p962_p10 }
  0x46   : > { %p968_p7 = pnand %p966_p5, %p963_p3 }
  0x48   : > { %971 = shalt.err (!%p968_p7)
}
  0x49   : > { %s972_s16 = scalar_lea.vmem %s191_s8, 16  ;;  %s979_s6 = scalar_lea.vmem %s191_s8, 32 }
  0x4a   : > { %p973_p9 = scmp.ne.s32.totalorder %s191_s8, %s972_s16  ;;  %p980_p1 = scmp.lt.s32.totalorder %s191_s8, %s191_s8 }
  0x4b   : > { %p981_p2 = scmp.lt.s32.totalorder %s979_s6, %s972_s16 }
  0x4c   : > { %p975_p12 = pnand %p973_p9, %p1231_p13 }
  0x4d   : > { %p982_p4 = por %p981_p2, %p980_p1 }
  0x4e   : > { %p976_p0 = pneg %p975_p12 }
  0x50   : > { %p983_p8 = pnand %p982_p4, %p976_p0 }
  0x52   : > { %986 = shalt.err (!%p983_p8)
}
  0x53   : > { %831 = dma.hbm_to_vmem [thread:$0]  (!%p1215_p11), %s1496_s2, 16, %s191_s8, [#allocation6]  }
  0x54   : > { %s1126_s30 = smov [#allocation10]   ;;  %s987_s11 = scalar_lea.hbm %s1498_s4, 16 }
  0x55   : > { %s212_s7 = sshll.u32 %s1126_s30, 4  ;;  %p988_p6 = scmp.ne.s32.totalorder %s1498_s4, %s987_s11  ;;  %s213_s7 = int_to_ptr.vmem [resolvable:$true] %s212_s7 }
  0x56   : > { %p994_p10 = scmp.lt.u32.totalorder %s987_s11, %s1498_s4 }
  0x57   : > { %p990_p4 = pnand %p988_p6, %p1231_p13 }
  0x59   : > { %p991_p8 = pneg %p990_p4 }
  0x5b   : > { %p996_p3 = pnand %p994_p10, %p991_p8 }
  0x5d   : > { %999 = shalt.err (!%p996_p3)
}
  0x5e   : > { %s1000_s8 = scalar_lea.vmem %s213_s7, 16  ;;  %s1007_s6 = scalar_lea.vmem %s213_s7, 32 }
  0x5f   : > { %p1001_p5 = scmp.ne.s32.totalorder %s213_s7, %s1000_s8  ;;  %p1008_p12 = scmp.lt.s32.totalorder %s213_s7, %s213_s7 }
  0x60   : > { %p1009_p0 = scmp.lt.s32.totalorder %s1007_s6, %s1000_s8 }
  0x61   : > { %p1003_p7 = pnand %p1001_p5, %p1231_p13 }
  0x62   : > { %p1010_p1 = por %p1009_p0, %p1008_p12 }
  0x63   : > { %p1004_p9 = pneg %p1003_p7 }
  0x65   : > { %p1011_p2 = pnand %p1010_p1, %p1004_p9 }
  0x67   : > { %1014 = shalt.err (!%p1011_p2)
}
  0x68   : > { %837 = dma.hbm_to_vmem [thread:$0]  (!%p1215_p11), %s1498_s4, 16, %s213_s7, [#allocation9]  }
  0x69   : > { %s1316_s14 = sadd.s32 1, %s1119_s21   ;;  %s30_s30 = sadd.s32 1, %s1115_s20 }
  0x6a   : > { %s27_s29 = ssub.s32 %s1119_s21, %s1316_s14  ;;  %p37_p13 = scmp.ne.s32.totalorder %s1115_s20, %s1111_s19 }
  0x6b   : > { %p28_p6 = scmp.eq.s32.totalorder %s27_s29, 0  ;;  %p38_p4 = scmp.eq.s32.totalorder %s1119_s21, 0 }
  0x6c   : > { %p1508_p8 = scmp.eq.s32.totalorder %s1185_s22, 1  ;;  %p850_p3 = scmp.lt.s32.totalorder %s1119_s21, 2 }
  0x6d   : > { %s1332_s10 = scalar_select %p28_p6, %s1115_s20, %s30_s30  }
  0x6e   : > { %p1326_p10 = por %p1508_p8, %p37_p13  ;;  %p39_p5 = por %p38_p4, %p37_p13 }
  0x6f   : > { %s223_s11 = sand.u32 1, %s1115_s20   ;;  %s756_s7 = sshll.u32 %s1119_s21, 10 }
  0x70   : > { %s738_s12 = sshll.u32 %s223_s11, 6  ;;  %s1339_s16 = scalar_lea.hbm %s1494_s0, %s756_s7 }
  0x71   : > { %s227_s8 = scalar_lea.vmem [#allocation2], %s738_s12  ;;  %p1343_p11 = pnand %p850_p3, %p39_p5 }
  0x72   : > { %s234_s6 = sshll.u32 %s227_s8, 4  ;;  %s1347_s17 = scalar_lea.sflag [#allocation3], %s223_s11  ;;  %s1341_s6 = int_to_ptr.vmem [resolvable:$true] %s234_s6 }
  0x73   : > { %s1015_s30 = scalar_lea.hbm %s1339_s16, 1024  ;;  %p1017_p9 = pneg %p1343_p11 }
  0x74   : > { %p1016_p7 = scmp.ne.s32.totalorder %s1339_s16, %s1015_s30  ;;  %s1020_s7 = scalar_lea.hbm %s1494_s0, 2048 }
  0x75   : > { %p1021_p1 = scmp.lt.u32.totalorder %s1339_s16, %s1494_s0  ;;  %p1022_p2 = scmp.lt.u32.totalorder %s1020_s7, %s1015_s30 }
  0x76   : > { %p1018_p12 = pnand %p1017_p9, %p1016_p7  ;;  %p1024_p6 = scmp.lt.u32.totalorder %s1015_s30, %s1339_s16 }
  0x77   : > { %p1023_p13 = por %p1022_p2, %p1021_p1 }
  0x78   : > { %p1019_p0 = pneg %p1018_p12 }
  0x79   : > { %p1025_p4 = por %p1024_p6, %p1023_p13 }
  0x7b   : > { %p1026_p8 = pnand %p1025_p4, %p1019_p0 }
  0x7d   : > { %1029 = shalt.err (!%p1026_p8)
}
  0x7e   : > { %s1030_s11 = scalar_lea.vmem %s1341_s6, 1024  ;;  %s1127_s8 = smov [#allocation2]  }
  0x7f   : > { %p1031_p3 = scmp.ne.s32.totalorder %s1341_s6, %s1030_s11  ;;  %s1035_s29 = sshll.u32 %s1127_s8, 4  ;;  %s1036_s29 = int_to_ptr.vmem [resolvable:$false] %s1035_s29 }
  0x80   : > { %s1037_s12 = scalar_lea.vmem %s1036_s29, 2048  ;;  %p1038_p12 = scmp.lt.s32.totalorder %s1341_s6, %s1036_s29 }
  0x81   : > { %p1033_p5 = pnand %p1031_p3, %p1017_p9  ;;  %p1039_p1 = scmp.lt.s32.totalorder %s1037_s12, %s1030_s11 }
  0x83   : > { %p1034_p7 = pneg %p1033_p5  ;;  %p1040_p2 = por %p1039_p1, %p1038_p12 }
  0x85   : > { %p1041_p13 = pnand %p1040_p2, %p1034_p7 }
  0x87   : > { %1044 = shalt.err (!%p1041_p13)
}
  0x88   : > { %841 = dma.hbm_to_vmem [thread:$0]  (!%p1343_p11), %s1339_s16, 1024, %s1341_s6, %s1347_s17, %s1124_s23, %s1124_s23, %s1125_s27  }
  0x89   : > { %p1511_p9 = scmp.ne.s32.totalorder %s1505_s26, 0 }
  0x8a   : > { %s1381_s30 = sand.u32 (!%p1511_p9), 1, %s1111_s19   ;;  %p1512_p0 = scmp.ne.s32.totalorder (!%p1511_p9), %s1503_s24, 0 }
  0x8b   : > { %246 = sbr.rel (%p1511_p9) target bundleno = 921 (0x399), region = 40  ;;  %s742_s7 = sshll.u32 (!%p1511_p9), %s1381_s30, 6 }
  0x8c   : > { %s249_s13 = scalar_lea.sflag (!%p1511_p9), [#allocation3], %s1381_s30  ;;  %s252_s28 = scalar_lea.vmem (!%p1511_p9), [#allocation2], %s742_s7 }
  0x92   : > { %1090 = dma.done.wait (%p1512_p0), %s249_s13, 1024  }
  0x93   : > { %1092 = vsyncadd (%p1512_p0), %s249_s13, 4294966272  ;;  %p1513_p11 = scmp.eq.s32.totalorder %s1185_s22, 0 }
  0x95   : > { %1094 = dma.done.wait (%p1513_p11), [#allocation6], 1040   ;;  %p1514_p6 = pmov %p1513_p11 }
  0x97   : > { %1096 = vsyncadd (%p1514_p6), [#allocation6], 4294966256  ;;  %p1515_p4 = pmov %p1514_p6 }
  0x99   : > { %1098 = dma.done.wait (%p1515_p4), [#allocation9], 144   ;;  %p1516_p8 = pmov %p1515_p4 }
  0x9a   : > { %v1399_v0 = vld [vmem:[%s252_s28] sm:$0xff]  ;;  %v1401_v1 = vld [vmem:[%s252_s28 + $0x10] sm:$0xff]  ;;  %v1405_v2 = vld [vmem:[%s252_s28 + $0x8] sm:$0xff]  ;;  %v1128_v11 = vmov 0.0|0.0   ;;  %vm1129_vm0 = vmmov 0   ;;  %v1130_v21 = vmov 0.0   ;;  %v344_v22 = vlaneseq }
  0x9b   : > { %1100 = vsyncadd (%p1516_p8), [#allocation9], 4294967152  ;;  %303 = vadd.xlane.f32.xlu0 %v1399_v0  ;;  %307 = vadd.xlane.f32.xlu1 %v1401_v1  ;;  %v1407_v3 = vld [vmem:[%s252_s28 + $0x18] sm:$0xff]  ;;  %v1411_v4 = vld [vmem:[%s252_s28 + $0x20] sm:$0xff]  ;;  %vm355_vm1 = vcmask 130112   ;;  %vm362_vm2 = vcmask 195712  }
  0x9c   : > { %v1413_v5 = vld [vmem:[%s252_s28 + $0x28] sm:$0xff]  ;;  %v1417_v6 = vld [vmem:[%s252_s28 + $0x30] sm:$0xff]  ;;  %v1419_v7 = vld [vmem:[%s252_s28 + $0x38] sm:$0xff]  ;;  %793 = vmatprep.subr.bf16.mxu0 %v1128_v11  ;;  %785 = vmatprep.mubr.msk.f32.mxu0 %vm1129_vm0, %v1130_v21  ;;  %v345_v23 = vand.u32 127, %v344_v22  ;;  %v1423_v24 = vshrl.u32 %v344_v22, 7  ;;  %vm369_vm3 = vcmask 261312  }
  0x9d   : > { %v327_v8 = vld [vmem:[#allocation5] sm:$0xff]  ;;  %v328_v9 = vld [vmem:[#allocation5 + $0x8] sm:$0xff]  ;;  %v329_v12 = vld [vmem:[#allocation5 + $0x10] sm:$0xff]  ;;  %788 = vmatprep.subr.mxu1 %v1130_v21  ;;  %790 = vmatprep.mubr.msk.f32.mxu1 %vm1129_vm0, %v1130_v21  ;;  %vm376_vm4 = vcmask 326912   ;;  %vm383_vm5 = vcmask 392512   ;;  %vm390_vm6 = vcmask 458112  }
  0x9e   : > { %v794_v10 = vpack.c.bf16 %v328_v9, %v327_v8  ;;  %v330_v13 = vld [vmem:[#allocation5 + $0x18] sm:$0xff]  ;;  %v331_v15 = vld [vmem:[#allocation5 + $0x20] sm:$0xff]  ;;  %v332_v16 = vld [vmem:[#allocation5 + $0x28] sm:$0xff]  ;;  %v350_v25 = vadd.s32 4294967288, %v345_v23  ;;  %v364_v26 = vadd.s32 4294967272, %v345_v23  ;;  %v357_v28 = vadd.s32 4294967280, %v345_v23 }
  0x9f   : > { %305 = vadd.xlane.f32.xlu0 %v1405_v2  ;;  %309 = vadd.xlane.f32.xlu1 %v1407_v3  ;;  %v797_v14 = vpack.c.bf16 %v330_v13, %v329_v12  ;;  %v800_v17 = vpack.c.bf16 %v332_v16, %v331_v15  ;;  %v333_v18 = vld [vmem:[#allocation5 + $0x30] sm:$0xff]  ;;  %v334_v19 = vld [vmem:[#allocation5 + $0x38] sm:$0xff]  ;;  %v371_v30 = vadd.s32 4294967264, %v345_v23  ;;  %v348_v31 = vsub.s32 %v345_v23, %v1423_v24  ;;  %v473_v15 = vld [vmem:[#allocation8] sm:$0xff]  ;;  %s294_s24 = scalar_lea.vmem [#allocation11], %s742_s7  ;;  %s757_s23 = sshll.u32 %s1185_s22, 10 }
  0xa0   : > { %795 = vmatpush3.bf16.msra.mxu0 %v794_v10  ;;  %v803_v20 = vpack.c.bf16 %v334_v19, %v333_v18  ;;  %v353_v33 = vsub.s32 %v350_v25, %v1423_v24  ;;  %v367_v34 = vsub.s32 %v364_v26, %v1423_v24  ;;  %v360_v35 = vsub.s32 %v357_v28, %v1423_v24  ;;  %v335_v16 = vld [vmem:[#allocation7] sm:$0x1]  ;;  %v474_v21 = vld [vmem:[#allocation10] sm:$0x1]  ;;  %s620_s26 = sshll.u32 %s294_s24, 4  ;;  %s1449_s6 = scalar_lea.hbm %s1499_s5, %s757_s23  ;;  %s1444_s26 = int_to_ptr.vmem [resolvable:$true] %s620_s26 }
  0xa1   : > { %796 = vmatprep.subr.bf16.mxu0 %v1128_v11  ;;  %v378_v39 = vadd.s32 4294967256, %v345_v23  ;;  %v374_v42 = vsub.s32 %v371_v30, %v1423_v24  ;;  %v385_v43 = vadd.s32 4294967248, %v345_v23  ;;  %v392_v47 = vadd.s32 4294967240, %v345_v23  ;;  %789 = vmatpush3.msra.mxu1 %v473_v15  ;;  %s607_s17 = scalar_lea.sflag [#allocation4], %s1381_s30  ;;  %s1045_s15 = scalar_lea.vmem %s1444_s26, 1024 }
  0xa2   : > { %vm397_vm7 = vcmask 523712   ;;  %vm399_vm8 = vcmask 523264   ;;  %vm475_vm9 = vcmask 64512   ;;  %p1046_p3 = scmp.ne.s32.totalorder %s1444_s26, %s1045_s15  ;;  %s1131_s22 = smov [#allocation11]  }
  0xa3   : > { %311 = vadd.xlane.f32.xlu0 %v1411_v4  ;;  %313 = vadd.xlane.f32.xlu1 %v1413_v5  ;;  %v381_v50 = vsub.s32 %v378_v39, %v1423_v24  ;;  %v388_v58 = vsub.s32 %v385_v43, %v1423_v24  ;;  %v395_v59 = vsub.s32 %v392_v47, %v1423_v24  ;;  %s1049_s11 = sshll.u32 %s1131_s22, 4  ;;  %s1050_s11 = int_to_ptr.vmem [resolvable:$false] %s1049_s11 }
  0xa4   : > { %798 = vmatpush3.bf16.msra.mxu0 %v797_v14  ;;  %p1047_p5 = pnand %p1046_p3, %p1326_p10  ;;  %s1051_s8 = scalar_lea.vmem %s1050_s11, 2048 }
  0xa5   : > { %799 = vmatprep.subr.bf16.mxu0 %v1128_v11  ;;  %p1052_p12 = scmp.lt.s32.totalorder %s1444_s26, %s1050_s11  ;;  %p1053_p1 = scmp.lt.s32.totalorder %s1051_s8, %s1045_s15 }
  0xa6   : > { %p1048_p7 = pneg %p1047_p5 }
  0xa7   : > { %315 = vadd.xlane.f32.xlu0 %v1417_v6  ;;  %317 = vadd.xlane.f32.xlu1 %v1419_v7  ;;  %p1054_p2 = por %p1053_p1, %p1052_p12 }
  0xa8   : > { %801 = vmatpush3.bf16.msra.mxu0 %v800_v17 }
  0xa9   : > { %802 = vmatprep.subr.bf16.mxu0 %v1128_v11  ;;  %p1055_p13 = pnand %p1054_p2, %p1048_p7 }
  0xac   : > { %804 = vmatpush3.bf16.msra.mxu0 %v803_v20 }
 0x128   : > { %v304_v27 = vpop.xlane.xlu0 %303  ;;  %v308_v29 = vpop.xlane.xlu1 %307 }
 0x129   : > { %v319_v32 = vmul.f32 0.0078125, %v304_v27  ;;  %v321_v36 = vmul.f32 0.0078125, %v308_v29  ;;  %v557_v29 = vsub.s32 0, %v1423_v24 }
 0x12b   : > { %v349_v44 = vrot.slane %v319_v32, %v348_v31  ;;  %v361_v48 = vrot.slane %v321_v36, %v360_v35 }
 0x12c   : > { %v306_v37 = vpop.xlane.xlu0 %305  ;;  %v310_v38 = vpop.xlane.xlu1 %309 }
 0x12d   : > { %v320_v40 = vmul.f32 0.0078125, %v306_v37  ;;  %v322_v41 = vmul.f32 0.0078125, %v310_v38 }
 0x12f   : > { %v354_v45 = vrot.slane %v320_v40, %v353_v33  ;;  %v368_v46 = vrot.slane %v322_v41, %v367_v34 }
 0x130   : > { %v312_v49 = vpop.xlane.xlu0 %311  ;;  %v314_v51 = vpop.xlane.xlu1 %313 }
 0x131   : > { %v356_v52 = vsel %vm355_vm1, %v354_v45, %v349_v44  ;;  %v323_v53 = vmul.f32 0.0078125, %v312_v49  ;;  %v324_v54 = vmul.f32 0.0078125, %v314_v51 }
 0x132   : > { %v363_v55 = vsel %vm362_vm2, %v361_v48, %v356_v52 }
 0x133   : > { %v370_v56 = vsel %vm369_vm3, %v368_v46, %v363_v55  ;;  %v375_v57 = vrot.slane %v323_v53, %v374_v42  ;;  %v382_v60 = vrot.slane %v324_v54, %v381_v50 }
 0x134   : > { %v316_v61 = vpop.xlane.xlu0 %315  ;;  %v318_v62 = vpop.xlane.xlu1 %317 }
 0x135   : > { %v377_v63 = vsel %vm376_vm4, %v375_v57, %v370_v56  ;;  %v325_v8 = vmul.f32 0.0078125, %v316_v61  ;;  %v326_v9 = vmul.f32 0.0078125, %v318_v62 }
 0x136   : > { %v384_v12 = vsel %vm383_vm5, %v382_v60, %v377_v63 }
 0x137   : > { %v389_v10 = vrot.slane %v325_v8, %v388_v58  ;;  %v396_v11 = vrot.slane %v326_v9, %v395_v59 }
 0x139   : > { %v391_v13 = vsel %vm390_vm6, %v389_v10, %v384_v12 }
 0x13a   : > { %v398_v14 = vsel %vm397_vm7, %v396_v11, %v391_v13 }
 0x13b   : > { %786 = vmatmul.mubr.msk.f32.vlgmr.msra.gmra.mrb[0].mxu0 %vm399_vm8, %v398_v14 }
 0x20e   : > { %v468_v17 = vpop.f32.mrb[0].mxu0 }
 0x20f   : > { %v469_v18 = vadd.f32 %v468_v17, %v335_v16  ;;  %v787_v19 = vpop.f32.mrb[1].mxu0 }
 0x211   : > { %v472_v20 = vmax.f32 %v469_v18, 0.0 }
 0x213   : > { %791 = vmatmul.mubr.msk.f32.vlgmr.msra.gmra.mrb[0].mxu1 %vm475_vm9, %v472_v20 }
 0x2e6   : > { %v545_v22 = vpop.f32.mrb[0].mxu1 }
 0x2e7   : > { %v546_v23 = vadd.f32 %v545_v22, %v474_v21  ;;  %v792_v25 = vpop.f32.mrb[1].mxu1 }
 0x2e9   : > { %v750_v26 = vmul.f32 -1.442695, %v546_v23 }
 0x2eb   : > { %899 = vpow2.f32 %v750_v26 }
 0x2f5   : > { %v900_v27 = vpop.eup %899 }
 0x2f6   : > { %v552_v28 = vadd.f32 1.0, %v900_v27 }
 0x2f8   : > { %901 = vrcp.f32 %v552_v28 }
 0x302   : > { %v902_v30 = vpop.eup %901 }
 0x303   : > { %v558_v31 = vrot.slane %v902_v30, %v557_v29 }
 0x305   : > { %564 = vbcast.lane.b32.xlu1 %v558_v31, 264  ;;  %560 = vbcast.lane.b32.xlu0 %v558_v31, 256 }
 0x309   : > { %568 = vbcast.lane.b32.xlu1 %v558_v31, 272  ;;  %576 = vbcast.lane.b32.xlu0 %v558_v31, 288 }
 0x30d   : > { %572 = vbcast.lane.b32.xlu1 %v558_v31, 280  ;;  %584 = vbcast.lane.b32.xlu0 %v558_v31, 304 }
 0x311   : > { %580 = vbcast.lane.b32.xlu1 %v558_v31, 296 }
 0x315   : > { %588 = vbcast.lane.b32.xlu1 %v558_v31, 312 }
 0x377   : > { %v565_v32 = vpop.permute.xlu1 %564  ;;  %v561_v33 = vpop.permute.xlu0 %560 }
 0x378   : > { %v591_v34 = vmul.f32 %v565_v32, %v1405_v2  ;;  %v590_v35 = vmul.f32 %v561_v33, %v1399_v0 }
 0x37a   : > { %599 = vst [vmem:[%s294_s24 + $0x8] sm:$0xff] %v591_v34  ;;  %598 = vst [vmem:[%s294_s24] sm:$0xff] %v590_v35 }
 0x37b   : > { %v569_v24 = vpop.permute.xlu1 %568  ;;  %v577_v36 = vpop.permute.xlu0 %576 }
 0x37c   : > { %v592_v37 = vmul.f32 %v569_v24, %v1401_v1  ;;  %v594_v38 = vmul.f32 %v577_v36, %v1411_v4 }
 0x37e   : > { %600 = vst [vmem:[%s294_s24 + $0x10] sm:$0xff] %v592_v37  ;;  %602 = vst [vmem:[%s294_s24 + $0x20] sm:$0xff] %v594_v38 }
 0x37f   : > { %v573_v39 = vpop.permute.xlu1 %572  ;;  %v585_v40 = vpop.permute.xlu0 %584 }
 0x380   : > { %v593_v2 = vmul.f32 %v573_v39, %v1407_v3  ;;  %v596_v0 = vmul.f32 %v585_v40, %v1417_v6 }
 0x382   : > { %601 = vst [vmem:[%s294_s24 + $0x18] sm:$0xff] %v593_v2  ;;  %604 = vst [vmem:[%s294_s24 + $0x30] sm:$0xff] %v596_v0 }
 0x383   : > { %v581_v41 = vpop.permute.xlu1 %580 }
 0x384   : > { %v595_v42 = vmul.f32 %v581_v41, %v1413_v5 }
 0x386   : > { %603 = vst [vmem:[%s294_s24 + $0x28] sm:$0xff] %v595_v42 }
 0x387   : > { %v589_v1 = vpop.permute.xlu1 %588 }
 0x388   : > { %v597_v3 = vmul.f32 %v589_v1, %v1419_v7 }
 0x38a   : > { %605 = vst [vmem:[%s294_s24 + $0x38] sm:$0xff] %v597_v3 }
 0x38b   : > { %1058 = shalt.err (!%p1055_p13)
}
 0x38c   : > { %s1059_s29 = scalar_lea.hbm %s1449_s6, 1024  ;;  %s1063_s13 = scalar_lea.hbm %s1499_s5, 2048 }
 0x38d   : > { %p1060_p9 = scmp.ne.s32.totalorder %s1449_s6, %s1059_s29  ;;  %p1064_p6 = scmp.lt.u32.totalorder %s1449_s6, %s1499_s5 }
 0x38e   : > { %p1065_p4 = scmp.lt.u32.totalorder %s1063_s13, %s1059_s29  ;;  %p1067_p3 = scmp.lt.u32.totalorder %s1059_s29, %s1449_s6 }
 0x38f   : > { %p1061_p0 = pnand %p1060_p9, %p1326_p10 }
 0x390   : > { %p1066_p8 = por %p1065_p4, %p1064_p6 }
 0x391   : > { %p1062_p11 = pneg %p1061_p0 }
 0x392   : > { %p1068_p5 = por %p1067_p3, %p1066_p8 }
 0x394   : > { %p1069_p7 = pnand %p1068_p5, %p1062_p11 }
 0x396   : > { %1072 = shalt.err (!%p1069_p7)
}
 0x397   : > { %s1132_s23 = smov 128   ;;  %s1133_s27 = smov 8  }
 0x398   : > { %823 = dma.vmem_to_hbm [thread:$0]  (%p1326_p10), %s1444_s26, 1024, %s1449_s6, %s607_s17, %s1132_s23, %s1132_s23, %s1133_s27  }
 0x399 PF: > { %s635_s16 = sand.u32 1, %s1107_s18   ;;  %p1517_p12 = scmp.ne.s32.totalorder %s1504_s25, 0 }
 0x39a   : > { %p1518_p1 = scmp.ge.s32.totalorder %s1119_s21, 2  ;;  %s636_s15 = scalar_lea.sflag [#allocation4], %s635_s16 }
 0x39c   : > { %p843_p2 = pnand %p1518_p1, %p1517_p12 }
 0x39e   : > { %1102 = dma.done.wait (!%p843_p2), %s636_s15, 1024  }
 0x39f   : > { %1104 = vsyncadd (!%p843_p2), %s636_s15, 4294966272  ;;  %p20_p13 = scmp.ge.s32.totalorder %s1316_s14, 4   ;;  %s1519_s18 = smov %s1111_s19 }
 0x3a0   : > { %s1520_s19 = smov %s1115_s20  ;;  %s1521_s20 = smov %s1332_s10 }
 0x3a1   : > { %s1522_s21 = smov %s1316_s14  ;;  %22 = sbr.rel (!%p20_p13) target bundleno = 7 (0x7), region = 101 }
 0x3a8   :  { %641 = vsyncpa [#allocation3], 1 }
 0x3a9   :  { %643 = vsyncpa [#allocation3 + $0x1], 1 }
 0x3aa   :  { %644 = vsyncpa [#allocation6], 1 }
 0x3ab   :  { %645 = vsyncpa [#allocation9], 1 }
 0x3ac   :  { %646 = vsyncpa [#allocation4], 1 }
 0x3ad   :  { %648 = vsyncpa [#allocation4 + $0x1], 1 }

</bundles_post_ra>
